<compile_context>
chip_gen: v6e
topology: v6e:2x2x1
jax: 0.10.0
libtpu: 0.0.40
codegen_flags: <defaults>
</compile_context>

<pallas_src>
import math
from functools import partial

import jax
import jax.numpy as jnp
from jax.experimental import pallas as pl
from jax.experimental.pallas import tpu as pltpu

LN_EPS = 1e-5            # torch.nn.LayerNorm default
_TOKEN_TILE = 512        # f32 I/O sweet spot (~85% of HBM roofline, measured)
_MIN_TOKEN_TILE = 64     # multiple of 8 (sublane)
_TARGET_GRID_STEPS = 8   # >= 4 steps per TensorCore on 2-TC (v7x) parts
# TODO(synk): sweep pl.Buffered(3) on the x-tile BlockSpec once TM is final.


def _probe_buffered():
    """Detect BlockSpec(pipeline_mode=...) support once, at import time."""
    if not hasattr(pl, "Buffered"):
        return False
    try:
        pl.BlockSpec((8, 128), lambda i: (0, 0), pipeline_mode=pl.Buffered(1))
        return True
    except TypeError:
        return False


_HAS_BUFFERED = _probe_buffered()


def _base_sublayer_kernel(x_ref, w1_ref, b1_ref, w2_ref, b2_ref, o_ref):
    """One token tile: LayerNorm (affine pre-folded) -> ff1 -> relu -> ff2 -> +x."""
    x = x_ref[...].astype(jnp.float32)                          # [TM, D]

    # --- LayerNorm moments in one pass over x (gamma/beta folded into W1/b1).
    # var = E[x^2] - mean^2 can go slightly negative from cancellation -> clamp.
    mean = jnp.mean(x, axis=-1, keepdims=True)                  # [TM, 1]
    mean_sq = jnp.mean(x * x, axis=-1, keepdims=True)           # [TM, 1]
    var = jnp.maximum(mean_sq - mean * mean, 0.0)
    xn = (x - mean) * jax.lax.rsqrt(var + LN_EPS)               # [TM, D]

    # --- ff1 (gamma/beta folded in) + relu: bf16 operands, f32 accumulation.
    h = jnp.dot(xn.astype(jnp.bfloat16), w1_ref[...],
                preferred_element_type=jnp.float32)             # [TM, H]
    h = jnp.maximum(h + b1_ref[...].astype(jnp.float32), 0.0)

    # --- ff2: bf16 operands, f32 accumulation.
    y = jnp.dot(h.astype(jnp.bfloat16), w2_ref[...],
                preferred_element_type=jnp.float32)             # [TM, D]
    y = y + b2_ref[...].astype(jnp.float32)

    # --- residual in f32, cast to I/O dtype on store.
    o_ref[...] = (x + y).astype(o_ref.dtype)


def _choose_token_tile(T):
    """Largest tile <= _TOKEN_TILE that still yields >= _TARGET_GRID_STEPS steps."""
    tm = _TOKEN_TILE
    while tm > _MIN_TOKEN_TILE and pl.cdiv(T, tm) < _TARGET_GRID_STEPS:
        tm //= 2
    return max(tm, _MIN_TOKEN_TILE)


def _vmem_limit_bytes(TM, D, H, io_itemsize):
    """Size the scoped-VMEM limit from the actual footprint (v7x has 64 MiB/TC)."""
    weight_bufs = 1 if _HAS_BUFFERED else 2
    x_io = 2 * (TM * D * io_itemsize) * 2                 # x + out, double-buffered
    weights = weight_bufs * 2 * (D * H) * 2               # two bf16 weight mats
    biases = weight_bufs * (H + D) * 4                    # f32 b1', b2
    interm = TM * H * 4 + 2 * TM * D * 4                  # h + x/xn f32 intermediates
    limit = int((x_io + weights + biases + interm) * 1.5) + (4 << 20)
    return min(max(limit, 8 << 20), 64 << 20)


def _build_pallas_call(T_pad, D, H, TM, out_dtype):
    """Construct the pallas_call for a [T_pad, D] token slab (trace-time only)."""
    io_itemsize = jnp.dtype(out_dtype).itemsize

    def const_spec(shape):
        # Constant-index operands (weights/biases): single-buffered where the
        # installed jax supports pipeline_mode, halving their VMEM footprint.
        idx = lambda i: (0,) * len(shape)
        if _HAS_BUFFERED:
            return pl.BlockSpec(shape, idx, pipeline_mode=pl.Buffered(1))
        return pl.BlockSpec(shape, idx)

    cost = pl.CostEstimate(
        flops=4 * T_pad * D * H + 10 * T_pad * D,          # 2 matmuls + LN/relu/residual
        transcendentals=T_pad,                             # rsqrt per token row
        bytes_accessed=(T_pad * D * 2 * io_itemsize        # x in + out
                        + 2 * D * H * 2                    # bf16 weights
                        + (H + D) * 4),                    # biases
    )

    return pl.pallas_call(
        _base_sublayer_kernel,
        out_shape=jax.ShapeDtypeStruct((T_pad, D), out_dtype),
        grid_spec=pltpu.PrefetchScalarGridSpec(
            num_scalar_prefetch=0,
            grid=(T_pad // TM,),
            in_specs=[
                pl.BlockSpec((TM, D), lambda i: (i, 0)),   # x tile (pipelined)
                const_spec((D, H)),                        # W1' = diag(gamma)@W1^T  (bf16)
                const_spec((1, H)),                        # b1' = beta@W1^T + b1    (f32)
                const_spec((H, D)),                        # W2^T (bf16)
                const_spec((1, D)),                        # b2   (f32)
            ],
            out_specs=pl.BlockSpec((TM, D), lambda i: (i, 0)),
        ),
        compiler_params=pltpu.CompilerParams(
            dimension_semantics=("parallel",),             # token axis across TCs
            vmem_limit_bytes=_vmem_limit_bytes(TM, D, H, io_itemsize),
        ),
        cost_estimate=cost,
    )


def prepare_base_sublayer_params(gamma, beta, w1, b1, w2, b2):
    """One-time parameter prep (do NOT call per forward).

    gamma, beta: [D] LayerNorm affine.
    w1: [H, D], b1: [H]  (torch Linear ff1: x @ w1.T + b1)
    w2: [D, H], b2: [D]  (torch Linear ff2)

    Folds the LayerNorm affine into ff1 and pre-casts weights to bf16.
    """
    w1_t = w1.T.astype(jnp.float32)                        # [D, H]
    w2_t = w2.T.astype(jnp.float32)                        # [H, D]
    gamma = gamma.astype(jnp.float32)
    beta = beta.astype(jnp.float32)
    w1_fold = gamma[:, None] * w1_t                        # [D, H]
    b1_fold = beta @ w1_t + b1.astype(jnp.float32)         # [H]
    return {
        "w1": w1_fold.astype(jnp.bfloat16),                # [D, H] bf16
        "b1": b1_fold.reshape(1, -1),                      # [1, H] f32
        "w2": w2_t.astype(jnp.bfloat16),                   # [H, D] bf16
        "b2": b2.astype(jnp.float32).reshape(1, -1),       # [1, D] f32
    }


@jax.jit
def base_sublayer(xs, params):
    """xs: [..., D]. Returns xs + ff2(relu(ff1(LayerNorm(xs))))."""
    orig_shape = xs.shape
    D = orig_shape[-1]
    w1, b1, w2, b2 = params["w1"], params["b1"], params["w2"], params["b2"]
    H = w1.shape[1]

    x2d = xs.reshape(-1, D)
    T = x2d.shape[0]
    TM = _choose_token_tile(T)
    T_pad = pl.cdiv(T, TM) * TM
    if T_pad != T:
        # Padded rows are LayerNorm-degenerate but harmless (no cross-row
        # reductions) and are sliced off below.
        x2d = jnp.pad(x2d, ((0, T_pad - T), (0, 0)))

    call = _build_pallas_call(T_pad, D, H, TM, xs.dtype)
    out = call(x2d, w1, b1, w2, b2)
    return out[:T].reshape(orig_shape)


# ----------------------------- references ----------------------------------


def _reference_f32(xs, gamma, beta, w1, b1, w2, b2):
    """Full-f32 reference of the module forward (torch weight layouts)."""
    x = xs.astype(jnp.float32)
    mean = jnp.mean(x, axis=-1, keepdims=True)
    var = jnp.mean((x - mean) ** 2, axis=-1, keepdims=True)
    xn = (x - mean) * jax.lax.rsqrt(var + LN_EPS) * gamma + beta
    h = jnp.maximum(xn @ w1.T + b1, 0.0)
    y = h @ w2.T + b2
    return (x + y).astype(xs.dtype)


def _reference_folded_bf16(xs, params):
    """Reference mirroring the kernel's folded / bf16-operand computation."""
    x = xs.astype(jnp.float32)
    mean = jnp.mean(x, axis=-1, keepdims=True)
    var = jnp.maximum(jnp.mean(x * x, axis=-1, keepdims=True) - mean * mean, 0.0)
    xn = (x - mean) * jax.lax.rsqrt(var + LN_EPS)
    h = jnp.dot(xn.astype(jnp.bfloat16), params["w1"],
                preferred_element_type=jnp.float32) + params["b1"]
    h = jnp.maximum(h, 0.0)
    y = jnp.dot(h.astype(jnp.bfloat16), params["w2"],
                preferred_element_type=jnp.float32) + params["b2"]
    return (x + y).astype(xs.dtype)


if __name__ == "__main__":
    # Small, lane-aligned config: D and H multiples of 128 so activations and
    # outputs fill full 128-lane vregs.  T = 512 tokens -> TM shrinks to 64,
    # giving an 8-step "parallel" grid (pipelining + >=4 steps/TC on v7x).
    batch, seq = 4, 128
    embed_dim = 128      # args.decoder_embed_dim
    hidden_dim = 256     # args.base_hidden_dim
    num_workers = 1

    key = jax.random.PRNGKey(0)
    kx, kw1, kw2, kb1, kb2, kg, kbe = jax.random.split(key, 7)

    xs = jax.random.normal(kx, (batch, seq, embed_dim), dtype=jnp.float32)

    # 'adjusted_xavier' scale (symmetric-uniform here; the torch code's
    # torch.rand gives U[0, a) — init-only difference, kernel-agnostic).
    std = math.sqrt(2.0) * math.sqrt(2.0 / float(embed_dim + hidden_dim * num_workers))
    a = math.sqrt(3.0) * std
    # torch Linear stores weight as [out, in]; forward is x @ W^T + b.
    w1 = (jax.random.uniform(kw1, (hidden_dim, embed_dim), dtype=jnp.float32) * 2.0 - 1.0) * a
    w2 = (jax.random.uniform(kw2, (embed_dim, hidden_dim), dtype=jnp.float32) * 2.0 - 1.0) * a
    # Biases are zero at init; small non-zero values exercise the adds/folding.
    b1 = jax.random.normal(kb1, (hidden_dim,), jnp.float32) * 0.02
    b2 = jax.random.normal(kb2, (embed_dim,), jnp.float32) * 0.02
    # LayerNorm affine (default ones/zeros, slightly perturbed to test the fold).
    gamma = 1.0 + jax.random.normal(kg, (embed_dim,), jnp.float32) * 0.02
    beta = jax.random.normal(kbe, (embed_dim,), jnp.float32) * 0.02

    # One-time prep (transpose, fold LN affine, cast to bf16).
    params = prepare_base_sublayer_params(gamma, beta, w1, b1, w2, b2)

    out = jax.block_until_ready(base_sublayer(xs, params))

    ref_bf16 = _reference_folded_bf16(xs, params)
    ref_f32 = _reference_f32(xs, gamma, beta, w1, b1, w2, b2)

    assert out.shape == xs.shape and out.dtype == xs.dtype
    assert jnp.allclose(out, ref_bf16, atol=2e-2, rtol=2e-2), \
        "mismatch vs folded bf16-matmul reference"
    assert jnp.allclose(out, ref_f32, atol=2e-1, rtol=5e-2), \
        "mismatch vs f32 reference"

    print("KERNEL_OK")
</pallas_src>

<mosaic_0001>
module attributes {stable_mosaic.version = 11 : i64} {
  func.func @_base_sublayer_kernel(%arg0: i32, %arg1: memref<64x128xf32, #tpu.memory_space<vmem>>, %arg2: memref<128x256xbf16, #tpu.memory_space<vmem>>, %arg3: memref<1x256xf32, #tpu.memory_space<vmem>>, %arg4: memref<256x128xbf16, #tpu.memory_space<vmem>>, %arg5: memref<1x128xf32, #tpu.memory_space<vmem>>, %arg6: memref<64x128xf32, #tpu.memory_space<vmem>>) attributes {dimension_semantics = [#tpu.dimension_semantics<parallel>], iteration_bounds = array<i64: 8>, scalar_prefetch = 0 : i64, scratch_operands = 0 : i64, tpu.core_type = #tpu.core_type<tc>, window_params = [{transform_indices = @transform_0, window_bounds = array<i64: 64, 128>}, {pipeline_mode = #tpu.pipeline_mode<synchronous>, transform_indices = @transform_1, window_bounds = array<i64: 128, 256>}, {pipeline_mode = #tpu.pipeline_mode<synchronous>, transform_indices = @transform_2, window_bounds = array<i64: 1, 256>}, {pipeline_mode = #tpu.pipeline_mode<synchronous>, transform_indices = @transform_3, window_bounds = array<i64: 256, 128>}, {pipeline_mode = #tpu.pipeline_mode<synchronous>, transform_indices = @transform_4, window_bounds = array<i64: 1, 128>}, {transform_indices = @transform_5, window_bounds = array<i64: 64, 128>}]} {
    %c0 = arith.constant 0 : index
    %c0_0 = arith.constant 0 : index
    %0 = vector.load %arg1[%c0, %c0_0] : memref<64x128xf32, #tpu.memory_space<vmem>>, vector<64x128xf32>
    %cst = arith.constant dense<0.000000e+00> : vector<64xf32>
    %1 = vector.multi_reduction <add>, %0, %cst [1] : vector<64x128xf32> to vector<64xf32>
    %2 = vector.shape_cast %1 : vector<64xf32> to vector<64x1xf32>
    %cst_1 = arith.constant 1.280000e+02 : f32
    %3 = vector.broadcast %cst_1 : f32 to vector<64x1xf32>
    %4 = arith.divf %2, %3 : vector<64x1xf32>
    %5 = arith.mulf %0, %0 : vector<64x128xf32>
    %cst_2 = arith.constant dense<0.000000e+00> : vector<64xf32>
    %6 = vector.multi_reduction <add>, %5, %cst_2 [1] : vector<64x128xf32> to vector<64xf32>
    %7 = vector.shape_cast %6 : vector<64xf32> to vector<64x1xf32>
    %cst_3 = arith.constant 1.280000e+02 : f32
    %8 = vector.broadcast %cst_3 : f32 to vector<64x1xf32>
    %9 = arith.divf %7, %8 : vector<64x1xf32>
    %10 = arith.mulf %4, %4 : vector<64x1xf32>
    %11 = arith.subf %9, %10 : vector<64x1xf32>
    %cst_4 = arith.constant 0.000000e+00 : f32
    %12 = vector.broadcast %cst_4 : f32 to vector<64x1xf32>
    %13 = arith.maximumf %11, %12 : vector<64x1xf32>
    %14 = vector.broadcast %4 : vector<64x1xf32> to vector<64x128xf32>
    %15 = arith.subf %0, %14 : vector<64x128xf32>
    %cst_5 = arith.constant 9.99999974E-6 : f32
    %16 = vector.broadcast %cst_5 : f32 to vector<64x1xf32>
    %17 = arith.addf %13, %16 : vector<64x1xf32>
    %18 = math.rsqrt %17 : vector<64x1xf32>
    %19 = vector.broadcast %18 : vector<64x1xf32> to vector<64x128xf32>
    %20 = arith.mulf %15, %19 : vector<64x128xf32>
    %21 = arith.truncf %20 : vector<64x128xf32> to vector<64x128xbf16>
    %c0_6 = arith.constant 0 : index
    %c0_7 = arith.constant 0 : index
    %22 = vector.load %arg2[%c0_6, %c0_7] : memref<128x256xbf16, #tpu.memory_space<vmem>>, vector<128x256xbf16>
    %cst_8 = arith.constant dense<0.000000e+00> : vector<64x256xf32>
    %23 = tpu.matmul %21, %22, %cst_8 {dimension_numbers = #tpu.dot_dimension_numbers<[1], [0], [0], [1], [0, 0, 1, 1], [], []>} : vector<64x128xbf16>, vector<128x256xbf16>, vector<64x256xf32> -> vector<64x256xf32>
    %c0_9 = arith.constant 0 : index
    %c0_10 = arith.constant 0 : index
    %24 = vector.load %arg3[%c0_9, %c0_10] : memref<1x256xf32, #tpu.memory_space<vmem>>, vector<1x256xf32>
    %25 = vector.broadcast %24 : vector<1x256xf32> to vector<64x256xf32>
    %26 = arith.addf %23, %25 : vector<64x256xf32>
    %cst_11 = arith.constant 0.000000e+00 : f32
    %27 = vector.broadcast %cst_11 : f32 to vector<64x256xf32>
    %28 = arith.maximumf %26, %27 : vector<64x256xf32>
    %29 = arith.truncf %28 : vector<64x256xf32> to vector<64x256xbf16>
    %c0_12 = arith.constant 0 : index
    %c0_13 = arith.constant 0 : index
    %30 = vector.load %arg4[%c0_12, %c0_13] : memref<256x128xbf16, #tpu.memory_space<vmem>>, vector<256x128xbf16>
    %cst_14 = arith.constant dense<0.000000e+00> : vector<64x128xf32>
    %31 = tpu.matmul %29, %30, %cst_14 {dimension_numbers = #tpu.dot_dimension_numbers<[1], [0], [0], [1], [0, 0, 1, 1], [], []>} : vector<64x256xbf16>, vector<256x128xbf16>, vector<64x128xf32> -> vector<64x128xf32>
    %c0_15 = arith.constant 0 : index
    %c0_16 = arith.constant 0 : index
    %32 = vector.load %arg5[%c0_15, %c0_16] : memref<1x128xf32, #tpu.memory_space<vmem>>, vector<1x128xf32>
    %33 = vector.broadcast %32 : vector<1x128xf32> to vector<64x128xf32>
    %34 = arith.addf %31, %33 : vector<64x128xf32>
    %35 = arith.addf %0, %34 : vector<64x128xf32>
    %c0_17 = arith.constant 0 : index
    %c0_18 = arith.constant 0 : index
    %36 = vector.load %arg6[%c0_17, %c0_18] : memref<64x128xf32, #tpu.memory_space<vmem>>, vector<64x128xf32>
    tpu.vector_store %arg6[%c0_17, %c0_18], %35 {strides = array<i32>} : memref<64x128xf32, #tpu.memory_space<vmem>>, vector<64x128xf32>,
    return
  }
  func.func @transform_0(%arg0: i32) -> (i32, i32) {
    %c0_i32 = arith.constant 0 : i32
    %c0_i32_0 = arith.constant 0 : i32
    return %arg0, %c0_i32 : i32, i32
  }
  func.func @transform_1(%arg0: i32) -> (i32, i32) {
    %c0_i32 = arith.constant 0 : i32
    %c0_i32_0 = arith.constant 0 : i32
    %c0_i32_1 = arith.constant 0 : i32
    return %c0_i32, %c0_i32_0 : i32, i32
  }
  func.func @transform_2(%arg0: i32) -> (i32, i32) {
    %c0_i32 = arith.constant 0 : i32
    %c0_i32_0 = arith.constant 0 : i32
    %c0_i32_1 = arith.constant 0 : i32
    return %c0_i32, %c0_i32_0 : i32, i32
  }
  func.func @transform_3(%arg0: i32) -> (i32, i32) {
    %c0_i32 = arith.constant 0 : i32
    %c0_i32_0 = arith.constant 0 : i32
    %c0_i32_1 = arith.constant 0 : i32
    return %c0_i32, %c0_i32_0 : i32, i32
  }
  func.func @transform_4(%arg0: i32) -> (i32, i32) {
    %c0_i32 = arith.constant 0 : i32
    %c0_i32_0 = arith.constant 0 : i32
    %c0_i32_1 = arith.constant 0 : i32
    return %c0_i32, %c0_i32_0 : i32, i32
  }
  func.func @transform_5(%arg0: i32) -> (i32, i32) {
    %c0_i32 = arith.constant 0 : i32
    %c0_i32_0 = arith.constant 0 : i32
    return %arg0, %c0_i32 : i32, i32
  }
}

</mosaic_0001>

<bundles_post_ra>
// kernel: base_sublayer.1
= control target key start
LH: loop header
LB: loop body
LE: loop exit
PB: predicated region body
PF: predicated region fallthrough
CT: control target
= control target key end

     0   :  { %10 = vsyncpa [#allocation3], 0  ;;  %s1639_s0 = inlined_call_operand.hbm [shape: f32[512,128], index: 0, kind: input, shape index: {}]   ;;  %s1640_s1 = inlined_call_operand.hbm [shape: bf16[128,256], index: 1, kind: input, shape index: {}]   ;;  %s1641_s2 = inlined_call_operand.vmem [shape: f32[1,256], index: 2, kind: input, shape index: {}]   ;;  %s1642_s3 = inlined_call_operand.hbm [shape: bf16[256,128], index: 3, kind: input, shape index: {}]   ;;  %s1643_s4 = inlined_call_operand.vmem [shape: f32[1,128], index: 4, kind: input, shape index: {}]   ;;  %s1644_s5 = inlined_call_operand.hbm [shape: f32[512,128], index: 5, kind: output, shape index: {}]  }
   0x1   :  { %12 = vsyncpa [#allocation3 + $0x1], 0 }
   0x2   :  { %13 = vsyncpa [#allocation6], 0 }
   0x3   :  { %14 = vsyncpa [#allocation4], 0 }
   0x4   :  { %16 = vsyncpa [#allocation4 + $0x1], 0  ;;  %s1341_s18 = smov 0   ;;  %s1343_s19 = smov 0  }
   0x5   :  { %s1345_s20 = smov 0   ;;  %s1347_s21 = smov 0  }
   0x6 LB: > { %s1362_s22 = sadd.s32 4294967295, %s1298_s21   ;;  %s927_s23 = sadd.s32 4294967294, %s1298_s21   ;;  %s1298_s21 = sphi %s1347_s21, %s1666_s21   ;;  %s1294_s20 = sphi %s1345_s20, %s1665_s20   ;;  %s1290_s19 = sphi %s1343_s19, %s1664_s19   ;;  %s1286_s18 = sphi %s1341_s18, %s1663_s18  }
   0x7   : > { %p42_p0 = scmp.ne.s32.totalorder %s1290_s19, %s1286_s18  ;;  %p1645_p1 = scmp.eq.s32.totalorder %s1362_s22, 0 }
   0x8   : > { %p150_p2 = scmp.eq.s32.totalorder %s1362_s22, 7  ;;  %p156_p3 = scmp.eq.s32.totalorder %s927_s23, 7 }
   0x9   : > { %p1371_p4 = por %p1645_p1, %p42_p0  ;;  %p928_p5 = scmp.ge.s32.totalorder %s1298_s21, 1 }
   0xa   : > { %p1376_p6 = por %p156_p3, %p42_p0  ;;  %p163_p7 = scmp.lt.s32.totalorder %s1298_s21, 9 }
   0xb   : > { %s1650_s24 = scalar_select %p1371_p4, 1, 0 }
   0xc   : > { %s1651_s25 = scalar_select %p1376_p6, 1, 0 }
   0xd   : > { %p1381_p8 = pnand %p928_p5, %p163_p7  ;;  %s1300_s27 = smov [#allocation5]  }
   0xe   : > { %s175_s28 = sshll.u32 %s1300_s27, 4  ;;  %s1301_s30 = smov [#allocation7]   ;;  %s176_s28 = int_to_ptr.vmem [resolvable:$true] %s175_s28 }
   0xf   : > { %s1652_s26 = scalar_select %p1381_p8, 1, 0 }
  0x10   : > { %p1032_p9 = pneg %p1381_p8  ;;  %s191_s6 = sshll.u32 %s1301_s30, 4  ;;  %s192_s6 = int_to_ptr.vmem [resolvable:$true] %s191_s6 }
  0x11   : > { %s1161_s7 = scalar_lea.vmem %s176_s28, 2048  ;;  %p1169_p3 = scmp.lt.s32.totalorder %s176_s28, %s176_s28 }
  0x12   : > { %p1389_p10 = pnand %p1032_p9, %p1645_p1  ;;  %p1162_p12 = scmp.ne.s32.totalorder %s176_s28, %s1161_s7 }
  0x13   : > { %p1170_p5 = scmp.lt.s32.totalorder %s1161_s7, %s1161_s7 }
  0x14   : > { %p1152_p11 = pneg %p1389_p10 }
  0x15   : > { %p1171_p7 = por %p1170_p5, %p1169_p3 }
  0x16   : > { %p1164_p13 = pnand %p1162_p12, %p1152_p11 }
  0x18   : > { %p1165_p0 = pneg %p1164_p13 }
  0x1a   : > { %p1172_p9 = pnand %p1171_p7, %p1165_p0 }
  0x1c   : > { %1175 = shalt.err (!%p1172_p9)
}
  0x1d   : > { %s1646_s8 = smov 128   ;;  %s1303_s9 = smov 8  }
  0x1e   : > { %1035 = dma.hbm_to_vmem [thread:$0]  (!%p1389_p10), %s1640_s1, 2048, %s176_s28, [#allocation6], %s1646_s8, %s1646_s8, %s1303_s9  }
  0x1f   : > { %s1187_s12 = scalar_lea.vmem %s192_s6, 2048  ;;  %p1195_p0 = scmp.lt.s32.totalorder %s192_s6, %s192_s6 }
  0x20   : > { %p1188_p12 = scmp.ne.s32.totalorder %s192_s6, %s1187_s12  ;;  %p1196_p5 = scmp.lt.s32.totalorder %s1187_s12, %s1187_s12 }
  0x22   : > { %p1190_p13 = pnand %p1188_p12, %p1152_p11  ;;  %p1197_p7 = por %p1196_p5, %p1195_p0 }
  0x24   : > { %p1191_p3 = pneg %p1190_p13 }
  0x26   : > { %p1198_p9 = pnand %p1197_p7, %p1191_p3 }
  0x28   : > { %1201 = shalt.err (!%p1198_p9)
}
  0x29   : > { %s1304_s13 = smov 64   ;;  %s1305_s14 = smov 4  }
  0x2a   : > { %1038 = dma.hbm_to_vmem [thread:$0]  (!%p1389_p10), %s1642_s3, 2048, %s192_s6, [#allocation6], %s1304_s13, %s1304_s13, %s1305_s14  }
  0x2b   : > { %s1415_s17 = sadd.s32 1, %s1298_s21   ;;  %s29_s27 = sadd.s32 1, %s1294_s20 }
  0x2c   : > { %s26_s23 = ssub.s32 %s1298_s21, %s1415_s17  ;;  %p36_p12 = scmp.ne.s32.totalorder %s1294_s20, %s1290_s19 }
  0x2d   : > { %p27_p11 = scmp.eq.s32.totalorder %s26_s23, 0  ;;  %p37_p13 = scmp.eq.s32.totalorder %s1298_s21, 0 }
  0x2e   : > { %p1428_p0 = por %p150_p2, %p36_p12  ;;  %p1049_p5 = scmp.lt.s32.totalorder %s1298_s21, 8 }
  0x2f   : > { %s1424_s28 = scalar_select %p27_p11, %s1294_s20, %s29_s27  }
  0x30   : > { %p38_p3 = por %p37_p13, %p36_p12  ;;  %s208_s29 = sand.u32 1, %s1294_s20  }
  0x31   : > { %s1654_s30 = scalar_select %p1428_p0, 1, 0 }
  0x32   : > { %s932_s7 = sshll.u32 %s208_s29, 6  ;;  %s978_s6 = sshll.u32 %s1298_s21, 10 }
  0x33   : > { %s1438_s12 = scalar_lea.hbm %s1639_s0, %s978_s6  ;;  %s212_s13 = scalar_lea.vmem [#allocation2], %s932_s7 }
  0x34   : > { %s219_s14 = sshll.u32 %s212_s13, 4  ;;  %p1442_p2 = pnand %p1049_p5, %p38_p3  ;;  %s1440_s14 = int_to_ptr.vmem [resolvable:$true] %s219_s14 }
  0x35   : > { %s1446_s16 = scalar_lea.sflag [#allocation3], %s208_s29  ;;  %s1202_s23 = scalar_lea.hbm %s1438_s12, 1024 }
  0x36   : > { %p1203_p10 = scmp.ne.s32.totalorder %s1438_s12, %s1202_s23  ;;  %p1204_p7 = pneg %p1442_p2 }
  0x37   : > { %s1207_s7 = scalar_lea.hbm %s1639_s0, 8192  ;;  %p1208_p12 = scmp.lt.s32.totalorder %s1438_s12, %s1639_s0 }
  0x38   : > { %p1205_p9 = pnand %p1204_p7, %p1203_p10  ;;  %p1209_p13 = scmp.lt.s32.totalorder %s1207_s7, %s1202_s23 }
  0x3a   : > { %p1206_p11 = pneg %p1205_p9  ;;  %p1210_p3 = por %p1209_p13, %p1208_p12 }
  0x3c   : > { %p1211_p5 = pnand %p1210_p3, %p1206_p11 }
  0x3e   : > { %1214 = shalt.err (!%p1211_p5)
}
  0x3f   : > { %s1215_s29 = scalar_lea.vmem %s1440_s14, 1024  ;;  %s1306_s13 = smov [#allocation2]  }
  0x40   : > { %p1216_p1 = scmp.ne.s32.totalorder %s1440_s14, %s1215_s29  ;;  %s1220_s8 = sshll.u32 %s1306_s13, 4  ;;  %s1221_s8 = int_to_ptr.vmem [resolvable:$false] %s1220_s8 }
  0x41   : > { %s1222_s27 = scalar_lea.vmem %s1221_s8, 2048  ;;  %p1223_p9 = scmp.lt.s32.totalorder %s1440_s14, %s1221_s8 }
  0x42   : > { %p1218_p6 = pnand %p1216_p1, %p1204_p7  ;;  %p1224_p0 = scmp.lt.s32.totalorder %s1222_s27, %s1215_s29 }
  0x44   : > { %p1219_p10 = pneg %p1218_p6  ;;  %p1225_p4 = por %p1224_p0, %p1223_p9 }
  0x46   : > { %p1226_p8 = pnand %p1225_p4, %p1219_p10 }
  0x48   : > { %1229 = shalt.err (!%p1226_p8)
}
  0x49   : > { %s1656_s23 = smov 128   ;;  %p1657_p1 = scmp.ne.s32.totalorder %s1652_s26, 0 }
  0x4a   : > { %1042 = dma.hbm_to_vmem [thread:$0]  (!%p1442_p2), %s1438_s12, 1024, %s1440_s14, %s1446_s16, %s1656_s23, %s1656_s23, %s1303_s9  }
  0x4b   : > { %231 = sbr.rel (%p1657_p1) target bundleno = 704 (0x2c0), region = 40  ;;  %s1473_s6 = sand.u32 (!%p1657_p1), 1, %s1290_s19  }
  0x4c   : > { %s936_s8 = sshll.u32 (!%p1657_p1), %s1473_s6, 6  ;;  %s234_s7 = scalar_lea.sflag (!%p1657_p1), [#allocation3], %s1473_s6 }
  0x4d   : > { %s1479_s15 = scalar_lea.vmem (!%p1657_p1), [#allocation2], %s936_s8  ;;  %p1658_p4 = scmp.ne.s32.totalorder (!%p1657_p1), %s1650_s24, 0 }
  0x50   : > { %1273 = dma.done.wait (%p1658_p4), %s234_s7, 1024  }
  0x51   : > { %1275 = vsyncadd (%p1658_p4), %s234_s7, 4294966272  ;;  %p1659_p6 = scmp.eq.s32.totalorder %s1362_s22, 0 }
  0x53   : > { %1277 = dma.done.wait (%p1659_p6), [#allocation6], 4096   ;;  %p1660_p8 = pmov %p1659_p6 }
  0x54   : > { %v1490_v0 = vld [vmem:[%s1479_s15] sm:$0xff]  ;;  %v1493_v1 = vld [vmem:[%s1479_s15 + $0x8] sm:$0xff]  ;;  %v1501_v4 = vld [vmem:[%s1479_s15 + $0x10] sm:$0xff]  ;;  %v1307_v32 = vmov 0   ;;  %s1573_s14 = scalar_lea.vmem [#allocation8], %s936_s8  ;;  %s979_s16 = sshll.u32 %s1362_s22, 10 }
  0x55   : > { %1279 = vsyncadd (%p1660_p8), [#allocation6], 4294963200  ;;  %283 = vadd.xlane.f32.xlu0 %v1490_v0  ;;  %v308_v2 = vmul.f32 %v1490_v0, %v1490_v0  ;;  %v309_v3 = vmul.f32 %v1493_v1, %v1493_v1  ;;  %v1505_v5 = vld [vmem:[%s1479_s15 + $0x18] sm:$0xff]  ;;  %v310_v6 = vmul.f32 %v1501_v4, %v1501_v4  ;;  %v1514_v10 = vld [vmem:[%s1479_s15 + $0x20] sm:$0xff]  ;;  %540 = vmatprep.mubr.bf16.mxu0 %v1307_v32  ;;  %s835_s10 = sshll.u32 %s1573_s14, 4  ;;  %s1593_s13 = scalar_lea.hbm %s1644_s5, %s979_s16  ;;  %s1595_s10 = int_to_ptr.vmem [resolvable:$true] %s835_s10 }
  0x56   : > { %v1094_v7 = vld [vmem:[#allocation5 + $0x74] ss:$8 sps:$4 sm:$0xff]   ;;  %v1096_v8 = vld [vmem:[#allocation5 + $0x70] ss:$8 sps:$4 sm:$0xff]   ;;  %v311_v9 = vmul.f32 %v1505_v5, %v1505_v5  ;;  %v1097_v11 = vld [vmem:[#allocation5 + $0x64] ss:$8 sps:$4 sm:$0xff]   ;;  %v312_v14 = vmul.f32 %v1514_v10, %v1514_v10 }
  0x57   : > { %316 = vadd.xlane.f32.xlu1 %v308_v2  ;;  %508 = vmatprep.subr.bf16.mxu0 %v1094_v7  ;;  %v1517_v12 = vld [vmem:[%s1479_s15 + $0x28] sm:$0xff]  ;;  %v1100_v15 = vld [vmem:[#allocation5 + $0x54] ss:$8 sps:$4 sm:$0xff]   ;;  %v1102_v16 = vld [vmem:[#allocation5 + $0x50] ss:$8 sps:$4 sm:$0xff]   ;;  %s822_s27 = scalar_lea.sflag [#allocation4], %s1473_s6 }
  0x58   : > { %509 = vmatpush1.bf16.msra.mxu0 %v1096_v8  ;;  %v1099_v13 = vld [vmem:[#allocation5 + $0x60] ss:$8 sps:$4 sm:$0xff]   ;;  %v313_v17 = vmul.f32 %v1517_v12, %v1517_v12  ;;  %v1526_v18 = vld [vmem:[%s1479_s15 + $0x30] sm:$0xff]  ;;  %v1103_v19 = vld [vmem:[#allocation5 + $0x44] ss:$8 sps:$4 sm:$0xff]   ;;  %s1230_s23 = scalar_lea.vmem %s1595_s10, 1024 }
  0x59   : > { %285 = vadd.xlane.f32.xlu0 %v1493_v1  ;;  %510 = vmatprep.subr.bf16.mxu0 %v1097_v11  ;;  %v1105_v20 = vld [vmem:[#allocation5 + $0x40] ss:$8 sps:$4 sm:$0xff]   ;;  %v1529_v21 = vld [vmem:[%s1479_s15 + $0x38] sm:$0xff]  ;;  %v314_v22 = vmul.f32 %v1526_v18, %v1526_v18  ;;  %v1109_v26 = vld [vmem:[#allocation5 + $0x24] ss:$8 sps:$4 sm:$0xff]   ;;  %p1231_p0 = scmp.ne.s32.totalorder %s1595_s10, %s1230_s23  ;;  %p1661_p2 = scmp.ne.s32.totalorder %s1654_s30, 0 }
  0x5a   : > { %v1106_v23 = vld [vmem:[#allocation5 + $0x34] ss:$8 sps:$4 sm:$0xff]   ;;  %v315_v24 = vmul.f32 %v1529_v21, %v1529_v21  ;;  %v1108_v25 = vld [vmem:[#allocation5 + $0x30] ss:$8 sps:$4 sm:$0xff]   ;;  %v1111_v27 = vld [vmem:[#allocation5 + $0x20] ss:$8 sps:$4 sm:$0xff]  }
  0x5b   : > { %318 = vadd.xlane.f32.xlu1 %v309_v3  ;;  %v1112_v28 = vld [vmem:[#allocation5 + $0x14] ss:$8 sps:$4 sm:$0xff]   ;;  %v1114_v29 = vld [vmem:[#allocation5 + $0x10] ss:$8 sps:$4 sm:$0xff]   ;;  %v1115_v30 = vld [vmem:[#allocation5 + $0x4] ss:$8 sps:$4 sm:$0xff]   ;;  %p1232_p7 = pnand %p1231_p0, %p1661_p2 }
  0x5c   : > { %511 = vmatpush1.bf16.msra.mxu0 %v1099_v13  ;;  %v1117_v31 = vld [vmem:[#allocation5] ss:$8 sps:$4 sm:$0xff]   ;;  %v1118_v33 = vld [vmem:[#allocation7 + $0x78] sm:$0xff]   ;;  %v1120_v35 = vld [vmem:[#allocation7 + $0x70] sm:$0xff]   ;;  %s1308_s22 = smov [#allocation8]  }
  0x5d   : > { %287 = vadd.xlane.f32.xlu0 %v1501_v4  ;;  %512 = vmatprep.subr.bf16.mxu0 %v1100_v15  ;;  %v1119_v34 = vld [vmem:[#allocation7 + $0x38] sm:$0xff]   ;;  %v1121_v36 = vld [vmem:[#allocation7 + $0x30] sm:$0xff]   ;;  %v1122_v37 = vld [vmem:[#allocation7 + $0x68] sm:$0xff]   ;;  %p1233_p11 = pneg %p1232_p7  ;;  %s1234_s8 = sshll.u32 %s1308_s22, 4  ;;  %s1235_s8 = int_to_ptr.vmem [resolvable:$false] %s1234_s8 }
  0x5e   : > { %980 = vmatprep.subr.bf16.mxu1 %v1118_v33  ;;  %v1123_v38 = vld [vmem:[#allocation7 + $0x28] sm:$0xff]   ;;  %v1124_v39 = vld [vmem:[#allocation7 + $0x60] sm:$0xff]   ;;  %v1126_v41 = vld [vmem:[#allocation7 + $0x58] sm:$0xff]   ;;  %s1236_s7 = scalar_lea.vmem %s1235_s8, 2048  ;;  %p1237_p12 = scmp.lt.s32.totalorder %s1595_s10, %s1235_s8 }
  0x5f   : > { %289 = vadd.xlane.f32.xlu1 %v1505_v5  ;;  %981 = vmatpush3.bf16.msra.mxu1 %v1119_v34  ;;  %v1125_v40 = vld [vmem:[#allocation7 + $0x20] sm:$0xff]   ;;  %v1127_v42 = vld [vmem:[#allocation7 + $0x18] sm:$0xff]   ;;  %p1238_p13 = scmp.lt.s32.totalorder %s1236_s7, %s1230_s23 }
  0x60   : > { %513 = vmatpush1.bf16.msra.mxu0 %v1102_v16  ;;  %982 = vmatprep.subr.bf16.mxu1 %v1120_v35 }
  0x61   : > { %320 = vadd.xlane.f32.xlu0 %v310_v6  ;;  %514 = vmatprep.subr.bf16.mxu0 %v1103_v19  ;;  %p1239_p3 = por %p1238_p13, %p1237_p12 }
  0x63   : > { %322 = vadd.xlane.f32.xlu1 %v311_v9  ;;  %983 = vmatpush3.bf16.msra.mxu1 %v1121_v36  ;;  %p1240_p5 = pnand %p1239_p3, %p1233_p11 }
  0x64   : > { %515 = vmatpush1.bf16.msra.mxu0 %v1105_v20  ;;  %984 = vmatprep.subr.bf16.mxu1 %v1122_v37 }
  0x65   : > { %291 = vadd.xlane.f32.xlu0 %v1514_v10  ;;  %516 = vmatprep.subr.bf16.mxu0 %v1106_v23 }
  0x67   : > { %293 = vadd.xlane.f32.xlu1 %v1517_v12  ;;  %985 = vmatpush3.bf16.msra.mxu1 %v1123_v38 }
  0x68   : > { %517 = vmatpush1.bf16.msra.mxu0 %v1108_v25  ;;  %986 = vmatprep.subr.bf16.mxu1 %v1124_v39 }
  0x69   : > { %324 = vadd.xlane.f32.xlu0 %v312_v14  ;;  %518 = vmatprep.subr.bf16.mxu0 %v1109_v26 }
  0x6b   : > { %326 = vadd.xlane.f32.xlu1 %v313_v17  ;;  %987 = vmatpush3.bf16.msra.mxu1 %v1125_v40 }
  0x6c   : > { %519 = vmatpush1.bf16.msra.mxu0 %v1111_v27  ;;  %988 = vmatprep.subr.bf16.mxu1 %v1126_v41 }
  0x6d   : > { %295 = vadd.xlane.f32.xlu0 %v1526_v18  ;;  %520 = vmatprep.subr.bf16.mxu0 %v1112_v28 }
  0x6f   : > { %297 = vadd.xlane.f32.xlu1 %v1529_v21  ;;  %989 = vmatpush3.bf16.msra.mxu1 %v1127_v42 }
  0x70   : > { %521 = vmatpush1.bf16.msra.mxu0 %v1114_v29 }
  0x71   : > { %328 = vadd.xlane.f32.xlu0 %v314_v22  ;;  %522 = vmatprep.subr.bf16.mxu0 %v1115_v30 }
  0x73   : > { %330 = vadd.xlane.f32.xlu1 %v315_v24 }
  0x74   : > { %523 = vmatpush1.bf16.msra.mxu0 %v1117_v31 }
  0xde   : > { %v284_v43 = vpop.xlane.xlu0 %283 }
  0xdf   : > { %v300_v44 = vmul.f32 0.0078125, %v284_v43 }
  0xe0   : > { %v317_v45 = vpop.xlane.xlu1 %316 }
  0xe1   : > { %v340_v46 = vmul.f32 %v300_v44, %v300_v44  ;;  %v332_v47 = vmul.f32 0.0078125, %v317_v45  ;;  %v364_v36 = vsub.f32 %v1490_v0, %v300_v44 }
  0xe2   : > { %v286_v48 = vpop.xlane.xlu0 %285 }
  0xe3   : > { %v348_v49 = vsub.f32 %v332_v47, %v340_v46  ;;  %v301_v50 = vmul.f32 0.0078125, %v286_v48 }
  0xe4   : > { %v319_v51 = vpop.xlane.xlu1 %318 }
  0xe5   : > { %v356_v52 = vmax.f32 %v348_v49, 0.0  ;;  %v341_v53 = vmul.f32 %v301_v50, %v301_v50  ;;  %v333_v54 = vmul.f32 0.0078125, %v319_v51  ;;  %v365_v38 = vsub.f32 %v1493_v1, %v301_v50 }
  0xe6   : > { %v288_v55 = vpop.xlane.xlu0 %287 }
  0xe7   : > { %v372_v56 = vadd.f32 1e-05, %v356_v52  ;;  %v349_v57 = vsub.f32 %v333_v54, %v341_v53  ;;  %v1538_v58 = vmul.f32 0.0078125, %v288_v55 }
  0xe8   : > { %v290_v59 = vpop.xlane.xlu1 %289 }
  0xe9   : > { %v357_v60 = vmax.f32 %v349_v57, 0.0  ;;  %v342_v61 = vmul.f32 %v1538_v58, %v1538_v58  ;;  %1134 = vrsqrt.f32 %v372_v56  ;;  %v1542_v62 = vmul.f32 0.0078125, %v290_v59 }
  0xea   : > { %v321_v63 = vpop.xlane.xlu0 %320  ;;  %v366_v57 = vsub.f32 %v1501_v4, %v1538_v58 }
  0xeb   : > { %v373_v2 = vadd.f32 1e-05, %v357_v60  ;;  %v334_v3 = vmul.f32 0.0078125, %v321_v63  ;;  %v343_v7 = vmul.f32 %v1542_v62, %v1542_v62  ;;  %v367_v59 = vsub.f32 %v1505_v5, %v1542_v62 }
  0xec   : > { %v323_v6 = vpop.xlane.xlu1 %322 }
  0xed   : > { %1136 = vrsqrt.f32 %v373_v2  ;;  %v350_v8 = vsub.f32 %v334_v3, %v342_v61  ;;  %v335_v9 = vmul.f32 0.0078125, %v323_v6 }
  0xee   : > { %v292_v11 = vpop.xlane.xlu0 %291 }
  0xef   : > { %v358_v13 = vmax.f32 %v350_v8, 0.0  ;;  %v351_v14 = vsub.f32 %v335_v9, %v343_v7  ;;  %v1546_v15 = vmul.f32 0.0078125, %v292_v11 }
  0xf0   : > { %v294_v16 = vpop.xlane.xlu1 %293 }
  0xf1   : > { %v374_v17 = vadd.f32 1e-05, %v358_v13  ;;  %v359_v19 = vmax.f32 %v351_v14, 0.0  ;;  %v344_v20 = vmul.f32 %v1546_v15, %v1546_v15  ;;  %v305_v22 = vmul.f32 0.0078125, %v294_v16 }
  0xf2   : > { %v325_v23 = vpop.xlane.xlu0 %324  ;;  %v368_v9 = vsub.f32 %v1514_v10, %v1546_v15  ;;  %v1128_v15 = vld [vmem:[#allocation7 + $0x50] sm:$0xff]  }
  0xf3   : > { %1138 = vrsqrt.f32 %v374_v17  ;;  %v375_v24 = vadd.f32 1e-05, %v359_v19  ;;  %v336_v25 = vmul.f32 0.0078125, %v325_v23  ;;  %v345_v27 = vmul.f32 %v305_v22, %v305_v22  ;;  %990 = vmatprep.subr.bf16.mxu1 %v1128_v15 }
  0xf4   : > { %v327_v26 = vpop.xlane.xlu1 %326  ;;  %v369_v58 = vsub.f32 %v1517_v12, %v305_v22  ;;  %v1130_v22 = vld [vmem:[#allocation7 + $0x48] sm:$0xff]  }
  0xf5   : > { %1140 = vrsqrt.f32 %v375_v24  ;;  %v352_v28 = vsub.f32 %v336_v25, %v344_v20  ;;  %v337_v29 = vmul.f32 0.0078125, %v327_v26  ;;  %v1129_v26 = vld [vmem:[#allocation7 + $0x10] sm:$0xff]  }
  0xf6   : > { %v296_v30 = vpop.xlane.xlu0 %295  ;;  %v1135_v31 = vpop.eup %1134  ;;  %991 = vmatpush3.bf16.msra.mxu1 %v1129_v26 }
  0xf7   : > { %v360_v33 = vmax.f32 %v352_v28, 0.0  ;;  %v353_v34 = vsub.f32 %v337_v29, %v345_v27  ;;  %v306_v35 = vmul.f32 0.0078125, %v296_v30  ;;  %v388_v46 = vmul.f32 %v1135_v31, %v364_v36  ;;  %v1131_v27 = vld [vmem:[#allocation7 + $0x8] sm:$0xff]   ;;  %992 = vmatprep.subr.bf16.mxu1 %v1130_v22  ;;  %v1132_v28 = vld [vmem:[#allocation7 + $0x40] sm:$0xff]  }
  0xf8   : > { %v298_v37 = vpop.xlane.xlu1 %297  ;;  %v1133_v29 = vld [vmem:[#allocation7] sm:$0xff]  }
  0xf9   : > { %v376_v39 = vadd.f32 1e-05, %v360_v33  ;;  %v361_v40 = vmax.f32 %v353_v34, 0.0  ;;  %v346_v41 = vmul.f32 %v306_v35, %v306_v35  ;;  %v307_v43 = vmul.f32 0.0078125, %v298_v37  ;;  %v416_v34 = vld [vmem:[%s1641_s2] sm:$0x3] }
  0xfa   : > { %v1137_v42 = vpop.eup %1136  ;;  %v329_v45 = vpop.xlane.xlu0 %328  ;;  %v370_v17 = vsub.f32 %v1526_v18, %v306_v35  ;;  %993 = vmatpush3.bf16.msra.mxu1 %v1131_v27 }
  0xfb   : > { %1142 = vrsqrt.f32 %v376_v39  ;;  %v377_v47 = vadd.f32 1e-05, %v361_v40  ;;  %v338_v48 = vmul.f32 0.0078125, %v329_v45  ;;  %v389_v49 = vmul.f32 %v1137_v42, %v365_v38  ;;  %994 = vmatprep.subr.bf16.mxu1 %v1132_v28 }
  0xfc   : > { %v347_v51 = vmul.f32 %v307_v43, %v307_v43  ;;  %v331_v52 = vpop.xlane.xlu1 %330  ;;  %v371_v19 = vsub.f32 %v1529_v21, %v307_v43 }
  0xfd   : > { %1144 = vrsqrt.f32 %v377_v47  ;;  %v354_v53 = vsub.f32 %v338_v48, %v346_v41  ;;  %v339_v54 = vmul.f32 0.0078125, %v331_v52  ;;  %v396_v44 = vpack.c.bf16 %v389_v49, %v388_v46 }
  0xfe   : > { %995 = vmatpush3.bf16.msra.mxu1 %v1133_v29 }
  0xff   : > { %v362_v55 = vmax.f32 %v354_v53, 0.0  ;;  %v355_v56 = vsub.f32 %v339_v54, %v347_v51  ;;  %541 = vmatmul.mubr.bf16.vlgmr.msra.gmra.mxu0 %v396_v44 }
 0x100   : > { %v1139_v50 = vpop.eup %1138  ;;  %550 = vmatprep.mubr.bf16.mxu0 %v1307_v32 }
 0x101   : > { %v378_v60 = vadd.f32 1e-05, %v362_v55  ;;  %v363_v61 = vmax.f32 %v355_v56, 0.0  ;;  %v390_v3 = vmul.f32 %v1139_v50, %v366_v57 }
 0x102   : > { %v1141_v63 = vpop.eup %1140 }
 0x103   : > { %1146 = vrsqrt.f32 %v378_v60  ;;  %v379_v2 = vadd.f32 1e-05, %v363_v61  ;;  %v391_v6 = vmul.f32 %v1141_v63, %v367_v59 }
 0x105   : > { %1148 = vrsqrt.f32 %v379_v2  ;;  %v397_v7 = vpack.c.bf16 %v391_v6, %v390_v3 }
 0x107   : > { %551 = vmatmul.mubr.bf16.gmra.mxu0 %v397_v7 }
 0x108   : > { %v1143_v8 = vpop.eup %1142  ;;  %560 = vmatprep.mubr.bf16.mxu0 %v1307_v32 }
 0x109   : > { %v392_v62 = vmul.f32 %v1143_v8, %v368_v9 }
 0x10a   : > { %v1145_v11 = vpop.eup %1144 }
 0x10b   : > { %v393_v13 = vmul.f32 %v1145_v11, %v369_v58 }
 0x10d   : > { %v398_v14 = vpack.c.bf16 %v393_v13, %v392_v62 }
 0x10f   : > { %561 = vmatmul.mubr.bf16.gmra.mxu0 %v398_v14 }
 0x110   : > { %v1147_v16 = vpop.eup %1146  ;;  %570 = vmatprep.mubr.bf16.mxu0 %v1307_v32  ;;  %v418_v32 = vlaneseq }
 0x111   : > { %v394_v23 = vmul.f32 %v1147_v16, %v370_v17 }
 0x112   : > { %v1149_v20 = vpop.eup %1148  ;;  %v419_v30 = vshrl.u32 %v418_v32, 7 }
 0x113   : > { %v395_v24 = vmul.f32 %v1149_v20, %v371_v19 }
 0x114   : > { %v424_v31 = vsub.s32 1, %v419_v30  ;;  %v420_v33 = vsub.s32 0, %v419_v30 }
 0x115   : > { %v399_v25 = vpack.c.bf16 %v395_v24, %v394_v23 }
 0x116   : > { %v425_v36 = vrot.slane %v416_v34, %v424_v31  ;;  %v421_v37 = vrot.slane %v416_v34, %v420_v33 }
 0x117   : > { %571 = vmatmul.mubr.bf16.gmra.mxu0 %v399_v25 }
 0x1bf   : > { %v542_v35 = vpop.f32.mrf.mxu0 }
 0x1c0   : > { %v543_v42 = vadd.f32 %v542_v35, %v421_v37 }
 0x1c1   : > { %v544_v38 = vpop.f32.mrf.mxu0 }
 0x1c2   : > { %v545_v40 = vadd.f32 %v544_v38, %v425_v36  ;;  %v581_v51 = vmax.f32 %v543_v42, 0.0 }
 0x1c3   : > { %v546_v39 = vpop.f32.mrf.mxu0 }
 0x1c4   : > { %v547_v41 = vadd.f32 %v546_v39, %v421_v37  ;;  %v582_v48 = vmax.f32 %v545_v40, 0.0  ;;  %v956_v40 = vld [vmem:[%s1643_s4] ss:$0 sm:$0xff] }
 0x1c5   : > { %v548_v43 = vpop.f32.mrf.mxu0 }
 0x1c6   : > { %v549_v45 = vadd.f32 %v548_v43, %v425_v36  ;;  %v583_v46 = vmax.f32 %v547_v41, 0.0 }
 0x1c7   : > { %v552_v47 = vpop.f32.mrf.mxu0 }
 0x1c8   : > { %v584_v49 = vmax.f32 %v549_v45, 0.0  ;;  %v597_v54 = vpack.c.bf16 %v583_v46, %v581_v51  ;;  %v553_v50 = vadd.f32 %v552_v47, %v421_v37 }
 0x1c9   : > { %v554_v52 = vpop.f32.mrf.mxu0 }
 0x1ca   : > { %v598_v53 = vpack.c.bf16 %v584_v49, %v582_v48  ;;  %v555_v55 = vadd.f32 %v554_v52, %v425_v36  ;;  %v585_v3 = vmax.f32 %v553_v50, 0.0 }
 0x1cb   : > { %v556_v44 = vpop.f32.mrf.mxu0 }
 0x1cc   : > { %v557_v56 = vadd.f32 %v556_v44, %v421_v37  ;;  %772 = vmatprep.mubr.bf16.mxu1 %v598_v53  ;;  %v586_v63 = vmax.f32 %v555_v55, 0.0 }
 0x1cd   : > { %v558_v57 = vpop.f32.mrf.mxu0  ;;  %773 = vmatmul.mubr.bf16.vlgmr.msra.gmra.mxu1 %v597_v54 }
 0x1ce   : > { %v559_v59 = vadd.f32 %v558_v57, %v425_v36  ;;  %v587_v60 = vmax.f32 %v557_v56, 0.0 }
 0x1cf   : > { %v562_v61 = vpop.f32.mrf.mxu0 }
 0x1d0   : > { %v588_v2 = vmax.f32 %v559_v59, 0.0  ;;  %v599_v8 = vpack.c.bf16 %v587_v60, %v585_v3  ;;  %v563_v62 = vadd.f32 %v562_v61, %v421_v37 }
 0x1d1   : > { %v564_v6 = vpop.f32.mrf.mxu0 }
 0x1d2   : > { %v600_v7 = vpack.c.bf16 %v588_v2, %v586_v63  ;;  %v565_v58 = vadd.f32 %v564_v6, %v425_v36  ;;  %v589_v23 = vmax.f32 %v563_v62, 0.0 }
 0x1d3   : > { %v566_v9 = vpop.f32.mrf.mxu0 }
 0x1d4   : > { %v567_v11 = vadd.f32 %v566_v9, %v421_v37  ;;  %780 = vmatprep.mubr.bf16.mxu1 %v600_v7  ;;  %v590_v19 = vmax.f32 %v565_v58, 0.0 }
 0x1d5   : > { %v568_v13 = vpop.f32.mrf.mxu0  ;;  %781 = vmatmul.mubr.bf16.gmra.mxu1 %v599_v8 }
 0x1d6   : > { %v569_v14 = vadd.f32 %v568_v13, %v425_v36  ;;  %v591_v16 = vmax.f32 %v567_v11, 0.0 }
 0x1d7   : > { %v572_v17 = vpop.f32.mrf.mxu0 }
 0x1d8   : > { %v592_v20 = vmax.f32 %v569_v14, 0.0  ;;  %v601_v15 = vpack.c.bf16 %v591_v16, %v589_v23  ;;  %v573_v28 = vadd.f32 %v572_v17, %v421_v37 }
 0x1d9   : > { %v574_v24 = vpop.f32.mrf.mxu0 }
 0x1da   : > { %v602_v25 = vpack.c.bf16 %v592_v20, %v590_v19  ;;  %v575_v22 = vadd.f32 %v574_v24, %v425_v36  ;;  %v593_v34 = vmax.f32 %v573_v28, 0.0 }
 0x1db   : > { %v576_v26 = vpop.f32.mrf.mxu0 }
 0x1dc   : > { %v577_v27 = vadd.f32 %v576_v26, %v421_v37  ;;  %788 = vmatprep.mubr.bf16.mxu1 %v602_v25  ;;  %v594_v31 = vmax.f32 %v575_v22, 0.0 }
 0x1dd   : > { %v578_v29 = vpop.f32.mrf.mxu0  ;;  %789 = vmatmul.mubr.bf16.gmra.mxu1 %v601_v15 }
 0x1de   : > { %v579_v32 = vadd.f32 %v578_v29, %v425_v36  ;;  %v595_v30 = vmax.f32 %v577_v27, 0.0 }
 0x1e0   : > { %v596_v33 = vmax.f32 %v579_v32, 0.0  ;;  %v603_v38 = vpack.c.bf16 %v595_v30, %v593_v34 }
 0x1e2   : > { %v604_v35 = vpack.c.bf16 %v596_v33, %v594_v31 }
 0x1e4   : > { %796 = vmatprep.mubr.bf16.mxu1 %v604_v35 }
 0x1e5   : > { %797 = vmatmul.mubr.bf16.gmra.mxu1 %v603_v38 }
 0x28d   : > { %v996_v39 = vpop.f32.mrf.mxu1 }
 0x28f   : > { %v997_v41 = vpop.f32.mrf.mxu1 }
 0x290   : > { %v998_v42 = vadd.f32 %v997_v41, %v996_v39 }
 0x291   : > { %v999_v37 = vpop.f32.mrf.mxu1 }
 0x292   : > { %v775_v43 = vadd.f32 %v998_v42, %v956_v40 }
 0x293   : > { %v1000_v45 = vpop.f32.mrf.mxu1 }
 0x294   : > { %v805_v36 = vadd.f32 %v775_v43, %v1490_v0  ;;  %v1001_v46 = vadd.f32 %v1000_v45, %v999_v37 }
 0x295   : > { %v1002_v47 = vpop.f32.mrf.mxu1 }
 0x296   : > { %813 = vst [vmem:[%s1573_s14] sm:$0xff] %v805_v36  ;;  %v778_v48 = vadd.f32 %v1001_v46, %v956_v40 }
 0x297   : > { %v1003_v49 = vpop.f32.mrf.mxu1 }
 0x298   : > { %v806_v51 = vadd.f32 %v778_v48, %v1493_v1  ;;  %v1004_v52 = vadd.f32 %v1003_v49, %v1002_v47 }
 0x299   : > { %v1005_v53 = vpop.f32.mrf.mxu1 }
 0x29a   : > { %814 = vst [vmem:[%s1573_s14 + $0x8] sm:$0xff] %v806_v51  ;;  %v783_v54 = vadd.f32 %v1004_v52, %v956_v40 }
 0x29b   : > { %v1006_v44 = vpop.f32.mrf.mxu1 }
 0x29c   : > { %v807_v0 = vadd.f32 %v783_v54, %v1501_v4  ;;  %v1007_v55 = vadd.f32 %v1006_v44, %v1005_v53 }
 0x29d   : > { %v1008_v56 = vpop.f32.mrf.mxu1 }
 0x29e   : > { %815 = vst [vmem:[%s1573_s14 + $0x10] sm:$0xff] %v807_v0  ;;  %v786_v50 = vadd.f32 %v1007_v55, %v956_v40 }
 0x29f   : > { %v1009_v57 = vpop.f32.mrf.mxu1 }
 0x2a0   : > { %v808_v59 = vadd.f32 %v786_v50, %v1505_v5  ;;  %v1010_v60 = vadd.f32 %v1009_v57, %v1008_v56 }
 0x2a1   : > { %v1011_v61 = vpop.f32.mrf.mxu1 }
 0x2a2   : > { %816 = vst [vmem:[%s1573_s14 + $0x18] sm:$0xff] %v808_v59  ;;  %v791_v1 = vadd.f32 %v1010_v60, %v956_v40 }
 0x2a3   : > { %v1012_v63 = vpop.f32.mrf.mxu1 }
 0x2a4   : > { %v809_v2 = vadd.f32 %v791_v1, %v1514_v10  ;;  %v1013_v3 = vadd.f32 %v1012_v63, %v1011_v61 }
 0x2a5   : > { %v1014_v4 = vpop.f32.mrf.mxu1 }
 0x2a6   : > { %817 = vst [vmem:[%s1573_s14 + $0x20] sm:$0xff] %v809_v2  ;;  %v794_v6 = vadd.f32 %v1013_v3, %v956_v40 }
 0x2a7   : > { %v1015_v7 = vpop.f32.mrf.mxu1 }
 0x2a8   : > { %v810_v8 = vadd.f32 %v794_v6, %v1517_v12  ;;  %v1016_v5 = vadd.f32 %v1015_v7, %v1014_v4 }
 0x2a9   : > { %v1017_v9 = vpop.f32.mrf.mxu1 }
 0x2aa   : > { %818 = vst [vmem:[%s1573_s14 + $0x28] sm:$0xff] %v810_v8  ;;  %v799_v58 = vadd.f32 %v1016_v5, %v956_v40 }
 0x2ab   : > { %v1018_v11 = vpop.f32.mrf.mxu1 }
 0x2ac   : > { %v811_v62 = vadd.f32 %v799_v58, %v1526_v18  ;;  %v1019_v13 = vadd.f32 %v1018_v11, %v1017_v9 }
 0x2ae   : > { %819 = vst [vmem:[%s1573_s14 + $0x30] sm:$0xff] %v811_v62  ;;  %v802_v10 = vadd.f32 %v1019_v13, %v956_v40 }
 0x2b0   : > { %v812_v12 = vadd.f32 %v802_v10, %v1529_v21 }
 0x2b2   : > { %820 = vst [vmem:[%s1573_s14 + $0x38] sm:$0xff] %v812_v12 }
 0x2b3   : > { %1243 = shalt.err (!%p1240_p5)
}
 0x2b4   : > { %s1244_s15 = scalar_lea.hbm %s1593_s13, 1024  ;;  %s1248_s9 = scalar_lea.hbm %s1644_s5, 8192 }
 0x2b5   : > { %p1245_p10 = scmp.ne.s32.totalorder %s1593_s13, %s1244_s15  ;;  %p1249_p4 = scmp.lt.s32.totalorder %s1593_s13, %s1644_s5 }
 0x2b6   : > { %p1250_p6 = scmp.lt.s32.totalorder %s1248_s9, %s1244_s15 }
 0x2b7   : > { %p1246_p9 = pnand %p1245_p10, %p1661_p2 }
 0x2b8   : > { %p1251_p8 = por %p1250_p6, %p1249_p4 }
 0x2b9   : > { %p1247_p1 = pneg %p1246_p9 }
 0x2bb   : > { %p1252_p0 = pnand %p1251_p8, %p1247_p1 }
 0x2bd   : > { %1255 = shalt.err (!%p1252_p0)
}
 0x2be   : > { %s1309_s16 = smov 128   ;;  %s1310_s11 = smov 8  }
 0x2bf   : > { %1030 = dma.vmem_to_hbm [thread:$0]  (%p1661_p2), %s1595_s10, 1024, %s1593_s13, %s822_s27, %s1309_s16, %s1309_s16, %s1310_s11  }
 0x2c0 PF: > { %p1052_p7 = scmp.ge.s32.totalorder %s1298_s21, 2  ;;  %s850_s29 = sand.u32 1, %s1286_s18  }
 0x2c1   : > { %p1662_p11 = scmp.ne.s32.totalorder %s1651_s25, 0  ;;  %s851_s23 = scalar_lea.sflag [#allocation4], %s850_s29 }
 0x2c3   : > { %p1044_p12 = pnand %p1052_p7, %p1662_p11 }
 0x2c5   : > { %p1045_p13 = pneg %p1044_p12 }
 0x2c7   : > { %1281 = dma.done.wait (%p1045_p13), %s851_s23, 1024  }
 0x2c8   : > { %1283 = vsyncadd (%p1045_p13), %s851_s23, 4294966272  ;;  %p19_p3 = scmp.ge.s32.totalorder %s1415_s17, 10   ;;  %s1663_s18 = smov %s1290_s19 }
 0x2c9   : > { %s1664_s19 = smov %s1294_s20  ;;  %s1665_s20 = smov %s1424_s28 }
 0x2ca   : > { %s1666_s21 = smov %s1415_s17  ;;  %21 = sbr.rel (!%p19_p3) target bundleno = 6 (0x6), region = 93 }
 0x2cf   :  { %856 = vsyncpa [#allocation3], 1 }
 0x2d0   :  { %858 = vsyncpa [#allocation3 + $0x1], 1 }
 0x2d1   :  { %859 = vsyncpa [#allocation6], 1 }
 0x2d2   :  { %860 = vsyncpa [#allocation4], 1 }
 0x2d3   :  { %862 = vsyncpa [#allocation4 + $0x1], 1 }

</bundles_post_ra>
